<compile_context>
chip_gen: v7x
topology: tpu7x:2x2x1
jax: 0.10.0
libtpu: 0.0.40
codegen_flags: <defaults>
</compile_context>

<pallas_src>
import functools

import numpy as np
import jax
import jax.numpy as jnp
from jax.experimental import pallas as pl
from jax.experimental.pallas import tpu as pltpu


_VMEM = pl.BlockSpec(memory_space=pltpu.MemorySpace.VMEM)


# ----------------------------------------------------------------------------
# Fused kernel: message MLP -> masked mean aggregation -> GRU memory update
#               + TimeEncoder (second output)
# ----------------------------------------------------------------------------
def tgn_fused_kernel(raw_ref, w1_ref, w2_ref, wi_ref, wh_ref, bias_ref,
                     mem_ref, cnt_ref, t_ref, tp_ref,
                     mem_out_ref, time_out_ref):
    HID = w1_ref.shape[1]
    MSG = w2_ref.shape[1]
    N, MEM = mem_ref.shape
    NK = raw_ref.shape[0]
    K = NK // N

    # --- 1) MessageFunctionMLP: Linear -> ReLU -> Linear (rows = raw messages) ---
    x = raw_ref[...]                                                       # [K*N, RAW]
    h1 = jnp.maximum(
        jnp.dot(x, w1_ref[...], preferred_element_type=jnp.float32)
        + bias_ref[0:1, 0:HID], 0.0)
    msgs = (jnp.dot(h1, w2_ref[...], preferred_element_type=jnp.float32)
            + bias_ref[1:2, 0:MSG])                                        # [K*N, MSG]

    # --- 2) MeanMessageAggregator: masked per-node mean ---
    # Row k*N + n holds the k-th message of node n -> the mean is K sublane-aligned
    # block adds; nodes with < K (incl. 0) messages are masked via the count vector.
    cnt = cnt_ref[...]                                                     # [N, 1]
    acc = jnp.zeros((N, MSG), jnp.float32)
    for k in range(K):                                                     # static unroll, K small
        valid_k = (cnt > float(k)).astype(jnp.float32)                     # [N, 1]
        acc = acc + msgs[k * N:(k + 1) * N, :] * valid_k
    agg = acc / jnp.maximum(cnt, 1.0)                                      # [N, MSG]

    # --- 3) MemoryUpdaterGRU (torch.nn.GRUCell semantics, gate order r,z,n) ---
    # Per-gate weight stacks -> each gate output is already lane-aligned [N, MEM].
    h = mem_ref[...]                                                       # [N, MEM]
    i_r = jnp.dot(agg, wi_ref[0 * MSG:1 * MSG, :], preferred_element_type=jnp.float32)
    i_z = jnp.dot(agg, wi_ref[1 * MSG:2 * MSG, :], preferred_element_type=jnp.float32)
    i_n = jnp.dot(agg, wi_ref[2 * MSG:3 * MSG, :], preferred_element_type=jnp.float32)
    h_r = jnp.dot(h, wh_ref[0 * MEM:1 * MEM, :], preferred_element_type=jnp.float32)
    h_z = jnp.dot(h, wh_ref[1 * MEM:2 * MEM, :], preferred_element_type=jnp.float32)
    h_n = jnp.dot(h, wh_ref[2 * MEM:3 * MEM, :], preferred_element_type=jnp.float32)
    r = jax.nn.sigmoid(i_r + h_r + bias_ref[2:3, 0:MEM])
    z = jax.nn.sigmoid(i_z + h_z + bias_ref[3:4, 0:MEM])
    n = jnp.tanh(i_n + bias_ref[4:5, 0:MEM] + r * (h_n + bias_ref[5:6, 0:MEM]))
    new_h = (1.0 - z) * n + z * h
    # Nodes with no pending messages are skipped in TGN -> keep their memory.
    mem_out_ref[...] = jnp.where(cnt > 0.0, new_h, h)

    # --- 4) TimeEncoder: cos(t @ W^T + b). W is [TD, 1] => rank-1 outer product,
    #        done on the VPU as a broadcast multiply, cos on the EUP.
    time_out_ref[...] = jnp.cos(t_ref[...] * tp_ref[0:1, :] + tp_ref[1:2, :])


# ----------------------------------------------------------------------------
# Host-side packing of PyTorch-convention parameters into kernel operands
# ----------------------------------------------------------------------------
def pack_tgn_params(w1, b1, w2, b2, w_ih, w_hh, b_ih, b_hh, w_time, b_time):
    """PyTorch-convention params -> packed, DMA-friendly kernel operands."""
    hid = w1.shape[0]
    msg = w2.shape[0]
    mem = w_hh.shape[1]
    width = max(hid, msg, mem)

    # Per-gate (r, z, n) weight stacks, pre-transposed for right multiplication.
    wi_stack = jnp.concatenate(
        [w_ih[0:mem].T, w_ih[mem:2 * mem].T, w_ih[2 * mem:].T], axis=0)    # [3*msg, mem]
    wh_stack = jnp.concatenate(
        [w_hh[0:mem].T, w_hh[mem:2 * mem].T, w_hh[2 * mem:].T], axis=0)    # [3*mem, mem]

    def _row(v):
        v = v.reshape(1, -1)
        return jnp.pad(v, ((0, 0), (0, width - v.shape[1])))

    # Single bias slab: [b1, b2, b_r(=b_ir+b_hr), b_z(=b_iz+b_hz), b_in, b_hn]
    bias_slab = jnp.concatenate([
        _row(b1), _row(b2),
        _row(b_ih[0:mem] + b_hh[0:mem]),
        _row(b_ih[mem:2 * mem] + b_hh[mem:2 * mem]),
        _row(b_ih[2 * mem:]),
        _row(b_hh[2 * mem:]),
    ], axis=0)                                                             # [6, width]

    tparams = jnp.concatenate([w_time.T, b_time.reshape(1, -1)], axis=0)   # [2, time_dim]
    return w1.T, w2.T, wi_stack, wh_stack, bias_slab, tparams


@functools.partial(jax.jit, static_argnames=())
def tgn_process_previous_batches(raw_msgs, counts, memory, times, packed_params):
    """raw_msgs: [K*N, raw_dim] (message-major), counts: [N,1], memory: [N, mem_dim],
    times: [M, 1] -> (updated memory [N, mem_dim], time features [M, time_dim])."""
    w1_t, w2_t, wi_stack, wh_stack, bias_slab, tparams = packed_params
    N, MEM = memory.shape
    NK, RAW = raw_msgs.shape
    HID = w1_t.shape[1]
    MSG = w2_t.shape[1]
    M = times.shape[0]
    TD = tparams.shape[1]

    args = (raw_msgs, w1_t, w2_t, wi_stack, wh_stack, bias_slab,
            memory, counts, times, tparams)

    cost = pl.CostEstimate(
        flops=int(2 * NK * RAW * HID + 2 * NK * HID * MSG + 3 * NK * MSG
                  + 2 * N * MSG * 3 * MEM + 2 * N * MEM * 3 * MEM
                  + 12 * N * MEM + 3 * M * TD),
        transcendentals=int(3 * N * MEM + M * TD),
        bytes_accessed=int(4 * (sum(int(np.prod(a.shape)) for a in args)
                                + N * MEM + M * TD)),
    )

    return pl.pallas_call(
        tgn_fused_kernel,
        out_shape=(jax.ShapeDtypeStruct((N, MEM), jnp.float32),
                   jax.ShapeDtypeStruct((M, TD), jnp.float32)),
        in_specs=[_VMEM] * len(args),
        out_specs=(_VMEM, _VMEM),
        input_output_aliases={6: 0},      # `memory` (input 6) updated in place
        cost_estimate=cost,
    )(*args)


# ----------------------------------------------------------------------------
# Exact float64 NumPy reference (PyTorch-equivalent math) for verification
# ----------------------------------------------------------------------------
def ref_tgn_numpy(raw_msgs, counts, memory, w1, b1, w2, b2, w_ih, w_hh, b_ih, b_hh,
                  times, w_time, b_time):
    f = lambda a: np.asarray(a, np.float64)
    raw, cnt, mem = f(raw_msgs), f(counts), f(memory)
    w1, b1, w2, b2 = f(w1), f(b1), f(w2), f(b2)
    w_ih, w_hh, b_ih, b_hh = f(w_ih), f(w_hh), f(b_ih), f(b_hh)
    t, wt, bt = f(times), f(w_time), f(b_time)

    NK = raw.shape[0]
    N, MEM = mem.shape
    K = NK // N

    sigmoid = lambda v: 1.0 / (1.0 + np.exp(-v))

    h1 = np.maximum(raw @ w1.T + b1, 0.0)
    msgs = (h1 @ w2.T + b2).reshape(K, N, -1)
    valid = (np.arange(K, dtype=np.float64).reshape(K, 1, 1) < cnt.reshape(1, N, 1))
    agg = (msgs * valid).sum(axis=0) / np.maximum(cnt, 1.0)

    gi = agg @ w_ih.T + b_ih
    gh = mem @ w_hh.T + b_hh
    r = sigmoid(gi[:, :MEM] + gh[:, :MEM])
    z = sigmoid(gi[:, MEM:2 * MEM] + gh[:, MEM:2 * MEM])
    n = np.tanh(gi[:, 2 * MEM:] + r * gh[:, 2 * MEM:])
    new_h = (1.0 - z) * n + z * mem
    new_mem = np.where(cnt > 0.0, new_h, mem)

    time_feats = np.cos(t @ wt.T + bt)
    return new_mem, time_feats


if __name__ == "__main__":
    # ---- module hyper-parameters (small, consistent with TGN.__init__) ----
    memory_dimension = 32
    time_dimension = 16
    num_edge_features = 16
    message_dimension = 32
    num_neighbors = 4

    edge_raw_message_dimension = 2 * memory_dimension + 1 + num_edge_features  # 81
    mlp_hidden = edge_raw_message_dimension // 2                               # 40

    num_nodes = 8      # nodes with pending raw messages
    max_msgs = 4       # max raw interaction messages per node (K)
    nk = num_nodes * max_msgs

    key = jax.random.PRNGKey(0)
    ks = jax.random.split(key, 14)

    def uniform(k, shape, fan_in):
        bound = 1.0 / np.sqrt(fan_in)
        return jax.random.uniform(k, shape, jnp.float32, -bound, bound)

    # MessageFunctionMLP (PyTorch Linear convention: weight [out, in])
    w1 = uniform(ks[0], (mlp_hidden, edge_raw_message_dimension), edge_raw_message_dimension)
    b1 = uniform(ks[1], (mlp_hidden,), edge_raw_message_dimension)
    w2 = uniform(ks[2], (message_dimension, mlp_hidden), mlp_hidden)
    b2 = uniform(ks[3], (message_dimension,), mlp_hidden)

    # MemoryUpdaterGRU == nn.GRUCell(message_dimension, memory_dimension)
    w_ih = uniform(ks[4], (3 * memory_dimension, message_dimension), memory_dimension)
    w_hh = uniform(ks[5], (3 * memory_dimension, memory_dimension), memory_dimension)
    b_ih = uniform(ks[6], (3 * memory_dimension,), memory_dimension)
    b_hh = uniform(ks[7], (3 * memory_dimension,), memory_dimension)

    # TimeEncoder: weight = 1 / 10**linspace(0, 9, out_dim), bias = 0 (as in the module)
    w_time = jnp.asarray((1.0 / 10.0 ** np.linspace(0, 9, time_dimension))
                         .astype(np.float32).reshape(time_dimension, 1))
    b_time = jnp.zeros((time_dimension,), jnp.float32)

    # ---- deterministic example inputs: raw interaction messages, message-major ----
    # raw_msgs[k*N + n] = k-th InteractionRawMessage of node n:
    # concat(source_memory, dest_memory, delta_time, edge_features)
    memory = jax.random.normal(ks[8], (num_nodes, memory_dimension), jnp.float32)
    src_mem = jnp.tile(memory[None], (max_msgs, 1, 1))
    dst_mem = jax.random.normal(ks[9], (max_msgs, num_nodes, memory_dimension), jnp.float32)
    delta_t = jax.random.uniform(ks[10], (max_msgs, num_nodes, 1), jnp.float32, 0.0, 10.0)
    edge_feats = jax.random.normal(ks[11], (max_msgs, num_nodes, num_edge_features), jnp.float32)
    raw_msgs = jnp.concatenate([src_mem, dst_mem, delta_t, edge_feats],
                               axis=-1).reshape(nk, edge_raw_message_dimension)

    # Ragged per-node message counts (<= K); node 4 has no pending messages.
    counts = jnp.asarray([[4.], [4.], [3.], [1.], [0.], [2.], [4.], [4.]], jnp.float32)

    # timestamps fed to the TimeEncoder (global_timestamps, one per (node, neighbor))
    times = jax.random.uniform(ks[12], (num_nodes * num_neighbors, 1), jnp.float32, 0.0, 100.0)

    # ---- exact reference first (memory buffer is aliased/updated in place by the kernel) ----
    mem_np = np.asarray(memory)
    ref_mem, ref_tf = ref_tgn_numpy(raw_msgs, counts, memory, w1, b1, w2, b2,
                                    w_ih, w_hh, b_ih, b_hh, times, w_time, b_time)

    # ---- run fused kernel ----
    packed = pack_tgn_params(w1, b1, w2, b2, w_ih, w_hh, b_ih, b_hh, w_time, b_time)
    new_mem, time_feats = tgn_process_previous_batches(raw_msgs, counts, memory, times, packed)
    jax.block_until_ready((new_mem, time_feats))

    # ---- verify ----
    assert new_mem.shape == (num_nodes, memory_dimension)
    assert time_feats.shape == (num_nodes * num_neighbors, time_dimension)
    assert np.allclose(np.asarray(new_mem, np.float64), ref_mem, atol=2e-3, rtol=2e-3), \
        float(np.max(np.abs(np.asarray(new_mem, np.float64) - ref_mem)))
    assert np.allclose(np.asarray(time_feats, np.float64), ref_tf, atol=2e-3, rtol=2e-3), \
        float(np.max(np.abs(np.asarray(time_feats, np.float64) - ref_tf)))
    # node with zero pending messages keeps its memory untouched (TGN skip semantics)
    assert np.allclose(np.asarray(new_mem)[4], mem_np[4], atol=1e-6)

    # TODO(synk): graph bookkeeping (_form_computation_graph, RawMessageStore,
    # TemporalNeighborhood dict/list manipulation) is host-side Python with no
    # dense-tensor equivalent; only the tensor hot paths are implemented here.
    print("KERNEL_OK")
</pallas_src>

<mosaic_0001>
module attributes {stable_mosaic.version = 11 : i64} {
  func.func @tgn_fused_kernel(%arg0: memref<32x81xf32, #tpu.memory_space<vmem>>, %arg1: memref<81x40xf32, #tpu.memory_space<vmem>>, %arg2: memref<40x32xf32, #tpu.memory_space<vmem>>, %arg3: memref<96x32xf32, #tpu.memory_space<vmem>>, %arg4: memref<96x32xf32, #tpu.memory_space<vmem>>, %arg5: memref<6x40xf32, #tpu.memory_space<vmem>>, %arg6: memref<8x32xf32, #tpu.memory_space<vmem>>, %arg7: memref<8x1xf32, #tpu.memory_space<vmem>>, %arg8: memref<32x1xf32, #tpu.memory_space<vmem>>, %arg9: memref<2x16xf32, #tpu.memory_space<vmem>>, %arg10: memref<8x32xf32, #tpu.memory_space<vmem>>, %arg11: memref<32x16xf32, #tpu.memory_space<vmem>>) attributes {dimension_semantics = [], scalar_prefetch = 0 : i64, scratch_operands = 0 : i64, tpu.core_type = #tpu.core_type<tc>} {
    %c0 = arith.constant 0 : index
    %c0_0 = arith.constant 0 : index
    %0 = vector.load %arg0[%c0, %c0_0] : memref<32x81xf32, #tpu.memory_space<vmem>>, vector<32x81xf32>
    %c0_1 = arith.constant 0 : index
    %c0_2 = arith.constant 0 : index
    %1 = vector.load %arg1[%c0_1, %c0_2] : memref<81x40xf32, #tpu.memory_space<vmem>>, vector<81x40xf32>
    %cst = arith.constant dense<0.000000e+00> : vector<32x40xf32>
    %2 = tpu.matmul %0, %1, %cst {dimension_numbers = #tpu.dot_dimension_numbers<[1], [0], [0], [1], [0, 0, 1, 1], [], []>} : vector<32x81xf32>, vector<81x40xf32>, vector<32x40xf32> -> vector<32x40xf32>
    %c0_3 = arith.constant 0 : index
    %c0_4 = arith.constant 0 : index
    %3 = vector.load %arg5[%c0_3, %c0_4] : memref<6x40xf32, #tpu.memory_space<vmem>>, vector<1x40xf32>
    %4 = vector.broadcast %3 : vector<1x40xf32> to vector<32x40xf32>
    %5 = arith.addf %2, %4 : vector<32x40xf32>
    %cst_5 = arith.constant 0.000000e+00 : f32
    %6 = vector.broadcast %cst_5 : f32 to vector<32x40xf32>
    %7 = arith.maximumf %5, %6 : vector<32x40xf32>
    %c0_6 = arith.constant 0 : index
    %c0_7 = arith.constant 0 : index
    %8 = vector.load %arg2[%c0_6, %c0_7] : memref<40x32xf32, #tpu.memory_space<vmem>>, vector<40x32xf32>
    %cst_8 = arith.constant dense<0.000000e+00> : vector<32x32xf32>
    %9 = tpu.matmul %7, %8, %cst_8 {dimension_numbers = #tpu.dot_dimension_numbers<[1], [0], [0], [1], [0, 0, 1, 1], [], []>} : vector<32x40xf32>, vector<40x32xf32>, vector<32x32xf32> -> vector<32x32xf32>
    %c1 = arith.constant 1 : index
    %c0_9 = arith.constant 0 : index
    %10 = vector.load %arg5[%c1, %c0_9] : memref<6x40xf32, #tpu.memory_space<vmem>>, vector<1x32xf32>
    %11 = vector.broadcast %10 : vector<1x32xf32> to vector<32x32xf32>
    %12 = arith.addf %9, %11 : vector<32x32xf32>
    %c0_10 = arith.constant 0 : index
    %c0_11 = arith.constant 0 : index
    %13 = vector.load %arg7[%c0_10, %c0_11] : memref<8x1xf32, #tpu.memory_space<vmem>>, vector<8x1xf32>
    %cst_12 = arith.constant 0.000000e+00 : f32
    %14 = vector.broadcast %cst_12 : f32 to vector<8x32xf32>
    %cst_13 = arith.constant 0.000000e+00 : f32
    %15 = vector.broadcast %cst_13 : f32 to vector<8x1xf32>
    %16 = arith.cmpf ogt, %13, %15 : vector<8x1xf32>
    %17 = arith.extui %16 : vector<8x1xi1> to vector<8x1xi32>
    %18 = arith.sitofp %17 : vector<8x1xi32> to vector<8x1xf32>
    %19 = vector.extract_strided_slice %12 {offsets = [0, 0], sizes = [8, 32], strides = [1, 1]} : vector<32x32xf32> to vector<8x32xf32>
    %20 = vector.broadcast %18 : vector<8x1xf32> to vector<8x32xf32>
    %21 = arith.mulf %19, %20 : vector<8x32xf32>
    %22 = arith.addf %14, %21 : vector<8x32xf32>
    %cst_14 = arith.constant 1.000000e+00 : f32
    %23 = vector.broadcast %cst_14 : f32 to vector<8x1xf32>
    %24 = arith.cmpf ogt, %13, %23 : vector<8x1xf32>
    %25 = arith.extui %24 : vector<8x1xi1> to vector<8x1xi32>
    %26 = arith.sitofp %25 : vector<8x1xi32> to vector<8x1xf32>
    %27 = vector.extract_strided_slice %12 {offsets = [8, 0], sizes = [8, 32], strides = [1, 1]} : vector<32x32xf32> to vector<8x32xf32>
    %28 = vector.broadcast %26 : vector<8x1xf32> to vector<8x32xf32>
    %29 = arith.mulf %27, %28 : vector<8x32xf32>
    %30 = arith.addf %22, %29 : vector<8x32xf32>
    %cst_15 = arith.constant 2.000000e+00 : f32
    %31 = vector.broadcast %cst_15 : f32 to vector<8x1xf32>
    %32 = arith.cmpf ogt, %13, %31 : vector<8x1xf32>
    %33 = arith.extui %32 : vector<8x1xi1> to vector<8x1xi32>
    %34 = arith.sitofp %33 : vector<8x1xi32> to vector<8x1xf32>
    %35 = vector.extract_strided_slice %12 {offsets = [16, 0], sizes = [8, 32], strides = [1, 1]} : vector<32x32xf32> to vector<8x32xf32>
    %36 = vector.broadcast %34 : vector<8x1xf32> to vector<8x32xf32>
    %37 = arith.mulf %35, %36 : vector<8x32xf32>
    %38 = arith.addf %30, %37 : vector<8x32xf32>
    %cst_16 = arith.constant 3.000000e+00 : f32
    %39 = vector.broadcast %cst_16 : f32 to vector<8x1xf32>
    %40 = arith.cmpf ogt, %13, %39 : vector<8x1xf32>
    %41 = arith.extui %40 : vector<8x1xi1> to vector<8x1xi32>
    %42 = arith.sitofp %41 : vector<8x1xi32> to vector<8x1xf32>
    %43 = vector.extract_strided_slice %12 {offsets = [24, 0], sizes = [8, 32], strides = [1, 1]} : vector<32x32xf32> to vector<8x32xf32>
    %44 = vector.broadcast %42 : vector<8x1xf32> to vector<8x32xf32>
    %45 = arith.mulf %43, %44 : vector<8x32xf32>
    %46 = arith.addf %38, %45 : vector<8x32xf32>
    %cst_17 = arith.constant 1.000000e+00 : f32
    %47 = vector.broadcast %cst_17 : f32 to vector<8x1xf32>
    %48 = arith.maximumf %13, %47 : vector<8x1xf32>
    %49 = vector.broadcast %48 : vector<8x1xf32> to vector<8x32xf32>
    %50 = arith.divf %46, %49 : vector<8x32xf32>
    %c0_18 = arith.constant 0 : index
    %c0_19 = arith.constant 0 : index
    %51 = vector.load %arg6[%c0_18, %c0_19] : memref<8x32xf32, #tpu.memory_space<vmem>>, vector<8x32xf32>
    %c0_20 = arith.constant 0 : index
    %c0_21 = arith.constant 0 : index
    %52 = vector.load %arg3[%c0_20, %c0_21] : memref<96x32xf32, #tpu.memory_space<vmem>>, vector<32x32xf32>
    %cst_22 = arith.constant dense<0.000000e+00> : vector<8x32xf32>
    %53 = tpu.matmul %50, %52, %cst_22 {dimension_numbers = #tpu.dot_dimension_numbers<[1], [0], [0], [1], [0, 0, 1, 1], [], []>} : vector<8x32xf32>, vector<32x32xf32>, vector<8x32xf32> -> vector<8x32xf32>
    %c32 = arith.constant 32 : index
    %c0_23 = arith.constant 0 : index
    %54 = vector.load %arg3[%c32, %c0_23] : memref<96x32xf32, #tpu.memory_space<vmem>>, vector<32x32xf32>
    %cst_24 = arith.constant dense<0.000000e+00> : vector<8x32xf32>
    %55 = tpu.matmul %50, %54, %cst_24 {dimension_numbers = #tpu.dot_dimension_numbers<[1], [0], [0], [1], [0, 0, 1, 1], [], []>} : vector<8x32xf32>, vector<32x32xf32>, vector<8x32xf32> -> vector<8x32xf32>
    %c64 = arith.constant 64 : index
    %c0_25 = arith.constant 0 : index
    %56 = vector.load %arg3[%c64, %c0_25] : memref<96x32xf32, #tpu.memory_space<vmem>>, vector<32x32xf32>
    %cst_26 = arith.constant dense<0.000000e+00> : vector<8x32xf32>
    %57 = tpu.matmul %50, %56, %cst_26 {dimension_numbers = #tpu.dot_dimension_numbers<[1], [0], [0], [1], [0, 0, 1, 1], [], []>} : vector<8x32xf32>, vector<32x32xf32>, vector<8x32xf32> -> vector<8x32xf32>
    %c0_27 = arith.constant 0 : index
    %c0_28 = arith.constant 0 : index
    %58 = vector.load %arg4[%c0_27, %c0_28] : memref<96x32xf32, #tpu.memory_space<vmem>>, vector<32x32xf32>
    %cst_29 = arith.constant dense<0.000000e+00> : vector<8x32xf32>
    %59 = tpu.matmul %51, %58, %cst_29 {dimension_numbers = #tpu.dot_dimension_numbers<[1], [0], [0], [1], [0, 0, 1, 1], [], []>} : vector<8x32xf32>, vector<32x32xf32>, vector<8x32xf32> -> vector<8x32xf32>
    %c32_30 = arith.constant 32 : index
    %c0_31 = arith.constant 0 : index
    %60 = vector.load %arg4[%c32_30, %c0_31] : memref<96x32xf32, #tpu.memory_space<vmem>>, vector<32x32xf32>
    %cst_32 = arith.constant dense<0.000000e+00> : vector<8x32xf32>
    %61 = tpu.matmul %51, %60, %cst_32 {dimension_numbers = #tpu.dot_dimension_numbers<[1], [0], [0], [1], [0, 0, 1, 1], [], []>} : vector<8x32xf32>, vector<32x32xf32>, vector<8x32xf32> -> vector<8x32xf32>
    %c64_33 = arith.constant 64 : index
    %c0_34 = arith.constant 0 : index
    %62 = vector.load %arg4[%c64_33, %c0_34] : memref<96x32xf32, #tpu.memory_space<vmem>>, vector<32x32xf32>
    %cst_35 = arith.constant dense<0.000000e+00> : vector<8x32xf32>
    %63 = tpu.matmul %51, %62, %cst_35 {dimension_numbers = #tpu.dot_dimension_numbers<[1], [0], [0], [1], [0, 0, 1, 1], [], []>} : vector<8x32xf32>, vector<32x32xf32>, vector<8x32xf32> -> vector<8x32xf32>
    %64 = arith.addf %53, %59 : vector<8x32xf32>
    %c2 = arith.constant 2 : index
    %c0_36 = arith.constant 0 : index
    %65 = vector.load %arg5[%c2, %c0_36] : memref<6x40xf32, #tpu.memory_space<vmem>>, vector<1x32xf32>
    %66 = vector.broadcast %65 : vector<1x32xf32> to vector<8x32xf32>
    %67 = arith.addf %64, %66 : vector<8x32xf32>
    %68 = arith.negf %67 : vector<8x32xf32>
    %69 = math.exp %68 : vector<8x32xf32>
    %cst_37 = arith.constant 1.000000e+00 : f32
    %70 = vector.broadcast %cst_37 : f32 to vector<8x32xf32>
    %71 = arith.addf %70, %69 : vector<8x32xf32>
    %72 = arith.divf %70, %71 : vector<8x32xf32>
    %73 = arith.addf %55, %61 : vector<8x32xf32>
    %c3 = arith.constant 3 : index
    %c0_38 = arith.constant 0 : index
    %74 = vector.load %arg5[%c3, %c0_38] : memref<6x40xf32, #tpu.memory_space<vmem>>, vector<1x32xf32>
    %75 = vector.broadcast %74 : vector<1x32xf32> to vector<8x32xf32>
    %76 = arith.addf %73, %75 : vector<8x32xf32>
    %77 = arith.negf %76 : vector<8x32xf32>
    %78 = math.exp %77 : vector<8x32xf32>
    %cst_39 = arith.constant 1.000000e+00 : f32
    %79 = vector.broadcast %cst_39 : f32 to vector<8x32xf32>
    %80 = arith.addf %79, %78 : vector<8x32xf32>
    %81 = arith.divf %79, %80 : vector<8x32xf32>
    %c4 = arith.constant 4 : index
    %c0_40 = arith.constant 0 : index
    %82 = vector.load %arg5[%c4, %c0_40] : memref<6x40xf32, #tpu.memory_space<vmem>>, vector<1x32xf32>
    %83 = vector.broadcast %82 : vector<1x32xf32> to vector<8x32xf32>
    %84 = arith.addf %57, %83 : vector<8x32xf32>
    %c5 = arith.constant 5 : index
    %c0_41 = arith.constant 0 : index
    %85 = vector.load %arg5[%c5, %c0_41] : memref<6x40xf32, #tpu.memory_space<vmem>>, vector<1x32xf32>
    %86 = vector.broadcast %85 : vector<1x32xf32> to vector<8x32xf32>
    %87 = arith.addf %63, %86 : vector<8x32xf32>
    %88 = arith.mulf %72, %87 : vector<8x32xf32>
    %89 = arith.addf %84, %88 : vector<8x32xf32>
    %90 = math.tanh %89 : vector<8x32xf32>
    %cst_42 = arith.constant 1.000000e+00 : f32
    %91 = vector.broadcast %cst_42 : f32 to vector<8x32xf32>
    %92 = arith.subf %91, %81 : vector<8x32xf32>
    %93 = arith.mulf %92, %90 : vector<8x32xf32>
    %94 = arith.mulf %81, %51 : vector<8x32xf32>
    %95 = arith.addf %93, %94 : vector<8x32xf32>
    %cst_43 = arith.constant 0.000000e+00 : f32
    %96 = vector.broadcast %cst_43 : f32 to vector<8x1xf32>
    %97 = arith.cmpf ogt, %13, %96 : vector<8x1xf32>
    %98 = vector.shape_cast %97 : vector<8x1xi1> to vector<8x1xi1>
    %99 = vector.broadcast %98 : vector<8x1xi1> to vector<8x32xi1>
    %100 = arith.select %99, %95, %51 : vector<8x32xi1>, vector<8x32xf32>
    %c0_44 = arith.constant 0 : index
    %c0_45 = arith.constant 0 : index
    %101 = vector.load %arg10[%c0_44, %c0_45] : memref<8x32xf32, #tpu.memory_space<vmem>>, vector<8x32xf32>
    tpu.vector_store %arg10[%c0_44, %c0_45], %100 {strides = array<i32>} : memref<8x32xf32, #tpu.memory_space<vmem>>, vector<8x32xf32>,
    %c0_46 = arith.constant 0 : index
    %c0_47 = arith.constant 0 : index
    %102 = vector.load %arg8[%c0_46, %c0_47] : memref<32x1xf32, #tpu.memory_space<vmem>>, vector<32x1xf32>
    %c0_48 = arith.constant 0 : index
    %c0_49 = arith.constant 0 : index
    %103 = vector.load %arg9[%c0_48, %c0_49] : memref<2x16xf32, #tpu.memory_space<vmem>>, vector<1x16xf32>
    %104 = vector.broadcast %102 : vector<32x1xf32> to vector<32x16xf32>
    %105 = vector.broadcast %103 : vector<1x16xf32> to vector<32x16xf32>
    %106 = arith.mulf %104, %105 : vector<32x16xf32>
    %c1_50 = arith.constant 1 : index
    %c0_51 = arith.constant 0 : index
    %107 = vector.load %arg9[%c1_50, %c0_51] : memref<2x16xf32, #tpu.memory_space<vmem>>, vector<1x16xf32>
    %108 = vector.broadcast %107 : vector<1x16xf32> to vector<32x16xf32>
    %109 = arith.addf %106, %108 : vector<32x16xf32>
    %110 = math.cos %109 : vector<32x16xf32>
    %c0_52 = arith.constant 0 : index
    %c0_53 = arith.constant 0 : index
    %111 = vector.load %arg11[%c0_52, %c0_53] : memref<32x16xf32, #tpu.memory_space<vmem>>, vector<32x16xf32>
    tpu.vector_store %arg11[%c0_52, %c0_53], %110 {strides = array<i32>} : memref<32x16xf32, #tpu.memory_space<vmem>>, vector<32x16xf32>,
    return
  }
}

</mosaic_0001>

<bundles_post_ra>
// kernel: tgn_process_previous_batches.1
= control target key start
LH: loop header
LB: loop body
LE: loop exit
PB: predicated region body
PF: predicated region fallthrough
CT: control target
= control target key end

     0   :  { %v1620_v3 = vmov 0   ;;  %vm57_vm0 = vcmask 662528   ;;  %vm70_vm1 = vcmask 1040384   ;;  %v1621_v29 = vmov 0.0   ;;  %s2273_s1 = inlined_call_operand.vmem [shape: f32[81,40], index: 1, kind: input, shape index: {}]   ;;  %s2274_s0 = inlined_call_operand.vmem [shape: f32[32,81], index: 0, kind: input, shape index: {}]   ;;  %s2275_s2 = inlined_call_operand.vmem [shape: f32[40,32], index: 2, kind: input, shape index: {}]   ;;  %s2276_s7 = inlined_call_operand.vmem [shape: f32[8,1], index: 7, kind: input, shape index: {}]   ;;  %s2277_s8 = inlined_call_operand.vmem [shape: f32[32,1], index: 8, kind: input, shape index: {}]   ;;  %s2278_s5 = inlined_call_operand.vmem [shape: f32[6,40], index: 5, kind: input, shape index: {}]   ;;  %s2279_s9 = inlined_call_operand.vmem [shape: f32[2,16], index: 9, kind: input, shape index: {}]   ;;  %s2280_s4 = inlined_call_operand.vmem [shape: f32[96,32], index: 4, kind: input, shape index: {}]   ;;  %s2281_s11 = inlined_call_operand.vmem [shape: f32[32,16], index: 11, kind: output, shape index: {1}]   ;;  %s2282_s6 = inlined_call_operand.vmem [shape: f32[8,32], index: 6, kind: input, shape index: {}, may-alias: {6,10}]   ;;  %s2283_s3 = inlined_call_operand.vmem [shape: f32[96,32], index: 3, kind: input, shape index: {}]   ;;  %s2284_s10 = inlined_call_operand.vmem [shape: f32[8,32], index: 10, kind: output, shape index: {0}, may-alias: {6,10}]  }
   0x1   :  { %v41_v0 = vld [vmem:[%s2273_s1] sm:$0xff]  ;;  %v42_v1 = vld [vmem:[%s2273_s1 + $0x8] sm:$0xff]  ;;  %v43_v2 = vld [vmem:[%s2273_s1 + $0x10] sm:$0xff]  ;;  %1585 = vset.pattern.permute.xlu0 %v1620_v3  ;;  %1591 = vset.pattern.permute.xlu1 %v1620_v3  ;;  %vm173_vm6 = vcmask 326656  }
   0x2   :  { %v1495_v4 = vpack.c.bf16 %v42_v1, %v41_v0  ;;  %v44_v5 = vld [vmem:[%s2273_s1 + $0x18] sm:$0xff]  ;;  %v45_v7 = vld [vmem:[%s2273_s1 + $0x20] sm:$0xff]  ;;  %v46_v8 = vld [vmem:[%s2273_s1 + $0x28] sm:$0xff] }
   0x3   :  { %v1499_v6 = vpack.c.bf16 %v44_v5, %v43_v2  ;;  %v37_v9 = vld [vmem:[%s2274_s0] sm:$0xff]  ;;  %v1503_v10 = vpack.c.bf16 %v46_v8, %v45_v7  ;;  %v164_v12 = vld [vmem:[%s2275_s2 + $0x8] sm:$0xff]  ;;  %v47_v14 = vld [vmem:[%s2273_s1 + $0x30] sm:$0xff] }
   0x4   :  { %1496 = vmatprep.subr.bf16.mxu0 %v1495_v4  ;;  %1407 = vmatprep.mubr.msk.f32.mxu0 %vm57_vm0, %v37_v9  ;;  %v163_v11 = vld [vmem:[%s2275_s2] sm:$0xff]  ;;  %v48_v15 = vld [vmem:[%s2273_s1 + $0x38] sm:$0xff]  ;;  %v50_v20 = vld [vmem:[%s2273_s1 + $0x48] sm:$0xff] }
   0x5   :  { %1498 = vmatpush3.bf16.msra.mxu0 %v1495_v4  ;;  %v271_v13 = vld [vmem:[%s2276_s7] sm:$0xff]  ;;  %v1515_v16 = vpack.c.bf16 %v164_v12, %v163_v11  ;;  %v1507_v18 = vpack.c.bf16 %v48_v15, %v47_v14  ;;  %v51_v22 = vld [vmem:[%s2273_s1 + $0x50] sm:$0x1]  ;;  %v38_v23 = vld [vmem:[%s2274_s0 + $0x8] sm:$0xff] }
   0x6   :  { %1500 = vmatprep.subr.bf16.mxu0 %v1499_v6  ;;  %v312_v17 = vmax.f32 %v271_v13, 1.0  ;;  %v49_v19 = vld [vmem:[%s2273_s1 + $0x40] sm:$0xff]  ;;  %v39_v24 = vld [vmem:[%s2274_s0 + $0x10] sm:$0xff]  ;;  %v40_v25 = vld [vmem:[%s2274_s0 + $0x18] sm:$0xff]  ;;  %vm272_vm2 = vcmp.gt.f32.partialorder %v271_v13, 0.0  ;;  %vm282_vm3 = vcmp.gt.f32.partialorder %v271_v13, 1.0 }
   0x7   :  { %1516 = vmatprep.subr.bf16.mxu1 %v1515_v16  ;;  %v1511_v21 = vpack.c.bf16 %v50_v20, %v49_v19  ;;  %v165_v26 = vld [vmem:[%s2275_s2 + $0x10] sm:$0xff]  ;;  %v166_v27 = vld [vmem:[%s2275_s2 + $0x18] sm:$0xff]  ;;  %v1297_v30 = vsel %vm272_vm2, 1.0, %v1621_v29  ;;  %v1298_v31 = vsel %vm282_vm3, 1.0, %v1621_v29  ;;  %v167_v33 = vld [vmem:[%s2275_s2 + $0x20] sm:$0xff]  ;;  %vm292_vm4 = vcmp.gt.f32.partialorder %v271_v13, 2.0 }
   0x8   :  { %1518 = vmatpush3.bf16.msra.mxu1 %v1515_v16  ;;  %315 = vperm.xlu0 %1585, %v312_v17   ;;  %v1519_v28 = vpack.c.bf16 %v166_v27, %v165_v26  ;;  %v1586_v32 = vpack.i.bf16 %v1298_v31, %v1297_v30  ;;  %v1299_v34 = vsel %vm292_vm4, 1.0, %v1621_v29  ;;  %v819_v35 = vld [vmem:[%s2277_s8] sm:$0xff]  ;;  %vm302_vm5 = vcmp.gt.f32.partialorder %v271_v13, 3.0  ;;  %v821_v37 = vld [vmem:[%s2277_s8 + $0x10] sm:$0xff]  ;;  %v820_v38 = vld [vmem:[%s2277_s8 + $0x8] sm:$0xff] }
   0x9   :  { %1502 = vmatpush3.bf16.msra.mxu0 %v1499_v6  ;;  %297 = vperm.xlu1 %1591, %v1299_v34   ;;  %v1300_v36 = vsel %vm302_vm5, 1.0, %v1621_v29  ;;  %v273_v39 = vsel %vm272_vm2, 1, %v1620_v3  ;;  %v822_v40 = vld [vmem:[%s2277_s8 + $0x18] sm:$0xff]  ;;  %v1286_v42 = vld [vmem:[%s2278_s5] ss:$0 sm:$0xff] }
   0xa   :  { %1504 = vmatprep.subr.bf16.mxu0 %v1503_v10  ;;  %1520 = vmatprep.subr.bf16.mxu1 %v1519_v28  ;;  %v1790_v54 = vld [vmem:[%s2279_s9] ss:$0 sm:$0xff]  ;;  %v1797_v56 = vld [vmem:[%s2279_s9 + $0x1] ss:$0 sm:$0xff]  ;;  %v1623_v31 = vmov 2475754826  }
   0xc   :  { %1522 = vmatpush3.bf16.msra.mxu1 %v1519_v28  ;;  %1587 = vperm.xlu0 %1585, %v1586_v32   ;;  %v1622_v28 = vmov 683565275  }
   0xd   :  { %1506 = vmatpush3.bf16.msra.mxu0 %v1503_v10  ;;  %1421 = vmatprep.subr.mxu1 %v167_v33 }
   0xe   :  { %1508 = vmatprep.subr.bf16.mxu0 %v1507_v18  ;;  %307 = vperm.xlu1 %1591, %v1300_v36  }
  0x10   :  { %1422 = vmatpush3.msra.mxu1 %v167_v33  ;;  %826 = vperm.xlu0 %1585, %v819_v35   ;;  %v1624_v33 = vmov 2131351028   ;;  %v1625_v35 = vmov 2102212464  }
  0x11   :  { %1510 = vmatpush3.bf16.msra.mxu0 %v1507_v18 }
  0x12   :  { %1512 = vmatprep.subr.bf16.mxu0 %v1511_v21  ;;  %831 = vperm.xlu1 %1591, %v820_v38  }
  0x14   :  { %836 = vperm.xlu0 %1585, %v821_v37   ;;  %v1626_v37 = vmov 920167782  }
  0x15   :  { %1514 = vmatpush3.bf16.msra.mxu0 %v1511_v21 }
  0x16   :  { %1405 = vmatprep.subr.msk.mxu0 %vm70_vm1, %v51_v22  ;;  %841 = vperm.xlu1 %1591, %v822_v40  }
  0x18   :  { %814 = vperm.xlu0 %1585, %v273_v39  }
  0x19   :  { %1406 = vmatpush3.msk.msra.mxu0 %vm70_vm1, %v51_v22 }
  0x1a   :  { %1408 = vmatmul.mubr.msk.f32.vlgmr.msra.gmra.mrb[0].mxu0 %vm57_vm0, %v38_v23 }
  0x1b   :  { %1410 = vmatprep.mubr.msk.f32.mxu0 %vm57_vm0, %v39_v24 }
  0x1e   :  { %1411 = vmatmul.mubr.msk.f32.gmra.mrb[2].mxu0 %vm57_vm0, %v40_v25 }
  0x87   :  { %v1778_v41 = vpop.permute.xlu0 %315 }
  0x88   :  { %v1785_v53 = vpop.permute.xlu1 %297 }
  0x8b   :  { %v1783_v47 = vpop.permute.xlu0 %1587 }
  0x8d   :  { %v1800_v61 = vpop.permute.xlu1 %307 }
  0x8f   :  { %v827_v57 = vpop.permute.xlu0 %826 }
  0x90   :  { %v848_v59 = vmul.f32 %v1790_v54, %v827_v57 }
  0x91   :  { %v832_v3 = vpop.permute.xlu1 %831 }
  0x92   :  { %v1804_v62 = vadd.f32 %v1797_v56, %v848_v59  ;;  %v849_v5 = vmul.f32 %v1790_v54, %v832_v3 }
  0x93   :  { %v837_v63 = vpop.permute.xlu0 %836 }
  0x94   :  { %v861_v0 = vand.u32 2147483647, %v1804_v62  ;;  %v864_v1 = vand.u32 2139095040, %v1804_v62  ;;  %v850_v2 = vmul.f32 %v1790_v54, %v837_v63  ;;  %v1817_v9 = vadd.f32 %v1797_v56, %v849_v5 }
  0x96   :  { %v865_v4 = vshrl.u32 %v864_v1, 23  ;;  %v868_v6 = vand.u32 8388607, %v861_v0  ;;  %v1814_v7 = vadd.f32 %v1797_v56, %v850_v2  ;;  %v967_v16 = vand.u32 2139095040, %v1817_v9 }
  0x97   :  { %v964_v26 = vand.u32 2147483647, %v1817_v9 }
  0x98   :  { %v1315_v8 = vadd.s32 4294967169, %v865_v4  ;;  %v1067_v10 = vand.u32 2147483647, %v1814_v7  ;;  %v1070_v11 = vand.u32 2139095040, %v1814_v7  ;;  %v869_v13 = vor.u32 8388608, %v868_v6 }
  0x99   :  { %v968_v20 = vshrl.u32 %v967_v16, 23 }
  0x9a   :  { %v871_v12 = vadd.s32 1, %v1315_v8  ;;  %v1071_v14 = vshrl.u32 %v1070_v11, 23  ;;  %v1074_v15 = vand.u32 8388607, %v1067_v10  ;;  %v1824_v23 = vshll.u32 %v869_v13, 8 }
  0x9b   :  { %v1319_v39 = vadd.s32 4294967169, %v968_v20 }
  0x9c   :  { %vm872_vm7 = vcmp.gt.s32.totalorder %v871_v12, 0  ;;  %v1323_v18 = vadd.s32 4294967169, %v1071_v14  ;;  %v1075_v19 = vor.u32 8388608, %v1074_v15 }
  0x9d   :  { %v873_v17 = vsel %vm872_vm7, %v871_v12, 0  ;;  %v974_v15 = vadd.s32 1, %v1319_v39 }
  0x9e   :  { %v874_v21 = vshrl.u32 %v873_v17, 5  ;;  %v875_v22 = vand.u32 31, %v873_v17  ;;  %v1077_v24 = vadd.s32 1, %v1323_v18  ;;  %v1826_v25 = vshll.u32 %v1075_v19, 8 }
  0x9f   :  { %vm975_vm2 = vcmp.gt.s32.totalorder %v974_v15, 0 }
  0xa0   :  { %v876_v27 = vsub.s32 32, %v875_v22  ;;  %v878_v30 = vshll.u32 %v1622_v28, %v875_v22  ;;  %v881_v32 = vshll.u32 %v1623_v31, %v875_v22  ;;  %v884_v34 = vshll.u32 %v1624_v33, %v875_v22 }
  0xa1   :  { %v887_v36 = vshll.u32 %v1625_v35, %v875_v22  ;;  %v890_v38 = vshll.u32 %v1626_v37, %v875_v22  ;;  %vm893_vm8 = vcmp.lt.s32.totalorder %v874_v21, 1  ;;  %vm894_vm9 = vcmp.lt.s32.totalorder %v874_v21, 2 }
  0xa2   :  { %v877_v40 = vshrl.u32 %v1622_v28, %v876_v27  ;;  %vm896_vm10 = vcmp.lt.s32.totalorder %v874_v21, 4  ;;  %vm1078_vm11 = vcmp.gt.s32.totalorder %v1077_v24, 0  ;;  %vm895_vm12 = vcmp.lt.s32.totalorder %v874_v21, 3 }
  0xa3   :  { %v1079_v57 = vsel %vm1078_vm11, %v1077_v24, 0 }
  0xa4   :  { %v1080_v4 = vshrl.u32 %v1079_v57, 5  ;;  %v1081_v11 = vand.u32 31, %v1079_v57 }
  0xa6   :  { %v1082_v20 = vsub.s32 32, %v1081_v11  ;;  %v1084_v22 = vshll.u32 %v1622_v28, %v1081_v11  ;;  %v1087_v24 = vshll.u32 %v1623_v31, %v1081_v11  ;;  %v1090_v21 = vshll.u32 %v1624_v33, %v1081_v11 }
  0xa7   :  { %vm1099_vm13 = vcmp.lt.s32.totalorder %v1080_v4, 1  ;;  %vm1100_vm14 = vcmp.lt.s32.totalorder %v1080_v4, 2  ;;  %vm1101_vm0 = vcmp.lt.s32.totalorder %v1080_v4, 3  ;;  %vm1102_vm1 = vcmp.lt.s32.totalorder %v1080_v4, 4 }
  0xa8   :  { %v1094_v39 = vshrl.u32 %v1626_v37, %v1082_v20 }
  0xed   :  { %v1409_v43 = vpop.f32.mrb[0].mxu0 }
  0xee   :  { %v146_v44 = vadd.f32 %v1409_v43, %v1286_v42  ;;  %v140_v45 = vpop.f32.mrb[1].mxu0  ;;  %v882_v43 = vshrl.u32 %v1624_v33, %v876_v27 }
  0xef   :  { %v141_v46 = vadd.f32 %v1286_v42, %v140_v45  ;;  %v888_v45 = vshrl.u32 %v1626_v37, %v876_v27 }
  0xf0   :  { %v160_v50 = vmax.f32 %v146_v44, 0.0  ;;  %v885_v44 = vshrl.u32 %v1625_v35, %v876_v27 }
  0xf1   :  { %v159_v48 = vmax.f32 %v141_v46, 0.0  ;;  %v1412_v49 = vpop.f32.mrb[2].mxu0  ;;  %v1627_v46 = vmov 1326507024  }
  0xf2   :  { %v156_v51 = vadd.f32 %v1412_v49, %v1286_v42  ;;  %v150_v52 = vpop.f32.mrb[3].mxu0 }
  0xf3   :  { %v151_v55 = vadd.f32 %v1286_v42, %v150_v52  ;;  %1423 = vmatprep.mubr.msk.f32.mxu1 %vm173_vm6, %v159_v48  ;;  %v879_v42 = vshrl.u32 %v1623_v31, %v876_v27  ;;  %v891_v48 = vshrl.u32 %v1627_v46, %v876_v27  ;;  %v889_v52 = vor.u32 %v888_v45, %v887_v36 }
  0xf4   :  { %1424 = vmatmul.mubr.msk.f32.vlgmr.msra.gmra.mrb[0].mxu1 %vm173_vm6, %v160_v50  ;;  %v162_v60 = vmax.f32 %v156_v51, 0.0  ;;  %v883_v50 = vor.u32 %v882_v43, %v881_v32  ;;  %v886_v51 = vor.u32 %v885_v44, %v884_v34  ;;  %v1093_v27 = vshll.u32 %v1625_v35, %v1081_v11 }
  0xf5   :  { %v161_v58 = vmax.f32 %v151_v55, 0.0  ;;  %v880_v49 = vor.u32 %v879_v42, %v878_v30  ;;  %v892_v55 = vor.u32 %v891_v48, %v890_v38  ;;  %v902_v2 = vsel %vm896_vm10, %v889_v52, 920167782 }
  0xf6   :  { %v898_v59 = vsel %vm896_vm10, %v886_v51, 2102212464  ;;  %v905_v63 = vsel %vm893_vm8, %v883_v50, %v886_v51  ;;  %v903_v6 = vsel %vm895_vm12, %v886_v51, %v902_v2  ;;  %v1096_v30 = vshll.u32 %v1626_v37, %v1081_v11 }
  0xf7   :  { %1426 = vmatprep.mubr.msk.f32.mxu1 %vm173_vm6, %v161_v58  ;;  %v897_v58 = vsel %vm893_vm8, %v877_v40, %v880_v49  ;;  %v899_v1 = vsel %vm895_vm12, %v883_v50, %v898_v59  ;;  %v906_v3 = vsel %vm896_vm10, %v892_v55, 1326507024  ;;  %v1083_v32 = vshrl.u32 %v1622_v28, %v1082_v20 }
  0xf8   :  { %1427 = vmatmul.mubr.msk.f32.gmra.mrb[2].mxu1 %vm173_vm6, %v162_v60  ;;  %v901_v60 = vsel %vm893_vm8, %v880_v49, %v883_v50  ;;  %v900_v5 = vsel %vm894_vm9, %v897_v58, %v899_v1  ;;  %v907_v8 = vsel %vm895_vm12, %v889_v52, %v906_v3  ;;  %v1085_v34 = vshrl.u32 %v1623_v31, %v1082_v20  ;;  %v842_v49 = vpop.permute.xlu1 %841 }
  0xf9   :  { %v904_v12 = vsel %vm894_vm9, %v901_v60, %v903_v6  ;;  %v908_v13 = vsel %vm894_vm9, %v905_v63, %v907_v8  ;;  %v916_v14 = vmul.u32 %v1824_v23, %v900_v5  ;;  %v1091_v36 = vshrl.u32 %v1625_v35, %v1082_v20 }
  0xfa   :  { %v1848_v16 = vmul.u32.u64.low %v1824_v23, %v908_v13  ;;  %v1849_v17 = vmul.u32.u64.high %v1824_v23, %v908_v13, %v1848_v16  ;;  %v1852_v18 = vmul.u32.u64.low %v1824_v23, %v904_v12  ;;  %v1853_v19 = vmul.u32.u64.high %v1824_v23, %v904_v12, %v1852_v18 }
  0xfb   :  { %v1088_v23 = vshrl.u32 %v1624_v33, %v1082_v20  ;;  %v1086_v40 = vor.u32 %v1085_v34, %v1084_v22  ;;  %v1092_v43 = vor.u32 %v1091_v36, %v1090_v21  ;;  %v1097_v44 = vshrl.u32 %v1627_v46, %v1082_v20 }
  0xfc   :  { %vm918_vm15 = vc.u32 %v1849_v17, %v1852_v18  ;;  %v919_v38 = vadd.s32 1, %v1853_v19  ;;  %v1095_v48 = vor.u32 %v1094_v39, %v1093_v27  ;;  %v851_v3 = vmul.f32 %v1790_v54, %v842_v49 }
  0xfd   :  { %v1089_v42 = vor.u32 %v1088_v23, %v1087_v24  ;;  %v1098_v51 = vor.u32 %v1097_v44, %v1096_v30  ;;  %v1103_v52 = vsel %vm1099_vm13, %v1083_v32, %v1086_v40  ;;  %v1104_v55 = vsel %vm1102_vm1, %v1092_v43, 2102212464 }
  0xfe   :  { %v920_v45 = vsel %vm918_vm15, %v919_v38, %v1853_v19  ;;  %v1108_v59 = vsel %vm1102_vm1, %v1095_v48, 920167782  ;;  %v976_v11 = vsel %vm975_vm2, %v974_v15, 0  ;;  %v971_v24 = vand.u32 8388607, %v964_v26 }
  0xff   :  { %v921_v50 = vadd.s32 %v920_v45, %v916_v14  ;;  %v1105_v57 = vsel %vm1101_vm0, %v1089_v42, %v1104_v55  ;;  %v1107_v58 = vsel %vm1099_vm13, %v1086_v40, %v1089_v42  ;;  %v1111_v60 = vsel %vm1099_vm13, %v1089_v42, %v1092_v43 }
 0x100   :  { %v1109_v1 = vsel %vm1101_vm0, %v1092_v43, %v1108_v59  ;;  %v1112_v2 = vsel %vm1102_vm1, %v1098_v51, 1326507024  ;;  %v1106_v5 = vsel %vm1100_vm14, %v1103_v52, %v1105_v57  ;;  %v978_v20 = vand.u32 31, %v976_v11 }
 0x101   :  { %v922_v63 = vadd.s32 536870912, %v921_v50  ;;  %v1110_v6 = vsel %vm1100_vm14, %v1107_v58, %v1109_v1  ;;  %v1113_v8 = vsel %vm1101_vm0, %v1095_v48, %v1112_v2  ;;  %v1897_v15 = vadd.f32 %v1797_v56, %v851_v3 }
 0x102   :  { %v1114_v13 = vsel %vm1100_vm14, %v1111_v60, %v1113_v8  ;;  %v1885_v14 = vmul.u32.u64.low %v1826_v25, %v1110_v6  ;;  %v1886_v16 = vmul.u32.u64.high %v1826_v25, %v1110_v6, %v1885_v14  ;;  %v1122_v4 = vmul.u32 %v1826_v25, %v1106_v5 }
 0x103   :  { %v1881_v12 = vshrl.u32 %v922_v63, 30  ;;  %v1890_v19 = vmul.u32.u64.low %v1826_v25, %v1114_v13  ;;  %v1891_v54 = vmul.u32.u64.high %v1826_v25, %v1114_v13, %v1890_v19  ;;  %v979_v21 = vsub.s32 32, %v978_v20 }
 0x104   :  { %v1125_v30 = vadd.s32 1, %v1886_v16  ;;  %v972_v23 = vor.u32 8388608, %v971_v24  ;;  %v990_v36 = vshll.u32 %v1625_v35, %v978_v20  ;;  %v977_v39 = vshrl.u32 %v976_v11, 5 }
 0x105   :  { %v924_v22 = vshll.u32 %v1881_v12, 30  ;;  %vm1124_vm3 = vc.u32 %v1891_v54, %v1885_v14  ;;  %v981_v56 = vshll.u32 %v1622_v28, %v978_v20  ;;  %v991_v40 = vshrl.u32 %v1626_v37, %v979_v21 }
 0x106   :  { %v1126_v34 = vsel %vm1124_vm3, %v1125_v30, %v1886_v16  ;;  %v982_v42 = vshrl.u32 %v1623_v31, %v979_v21  ;;  %v984_v43 = vshll.u32 %v1623_v31, %v978_v20  ;;  %v985_v44 = vshrl.u32 %v1624_v33, %v979_v21 }
 0x107   :  { %v925_v27 = vsub.s32 %v921_v50, %v924_v22  ;;  %v1127_v38 = vadd.s32 %v1126_v34, %v1122_v4  ;;  %v917_v45 = vadd.s32 %v1852_v18, %v1849_v17  ;;  %v987_v49 = vshll.u32 %v1624_v33, %v978_v20 }
 0x108   :  { %v988_v50 = vshrl.u32 %v1625_v35, %v979_v21  ;;  %v992_v52 = vor.u32 %v991_v40, %v990_v36  ;;  %v993_v55 = vshll.u32 %v1626_v37, %v978_v20  ;;  %v994_v57 = vshrl.u32 %v1627_v46, %v979_v21 }
 0x109   :  { %v927_v32 = vsub.s32 0, %v925_v27  ;;  %v1128_v48 = vadd.s32 536870912, %v1127_v38  ;;  %v947_v58 = vsub.s32 4, %v1881_v12  ;;  %v980_v60 = vshrl.u32 %v1622_v28, %v979_v21 }
 0x10a   :  { %v1920_v63 = vshll.u32 %v972_v23, 8  ;;  %v983_v18 = vor.u32 %v982_v42, %v981_v56  ;;  %v986_v1 = vor.u32 %v985_v44, %v984_v43  ;;  %vm999_vm4 = vcmp.lt.s32.totalorder %v977_v39, 4 }
 0x10b   :  { %v1316_v25 = vmin.u32 %v927_v32, %v925_v27  ;;  %v1917_v59 = vshrl.u32 %v1128_v48, 30  ;;  %v989_v3 = vor.u32 %v988_v50, %v987_v49  ;;  %v995_v5 = vor.u32 %v994_v57, %v993_v55 }
 0x10c   :  { %vm996_vm5 = vcmp.lt.s32.totalorder %v977_v39, 1  ;;  %vm997_vm7 = vcmp.lt.s32.totalorder %v977_v39, 2  ;;  %vm998_vm8 = vcmp.lt.s32.totalorder %v977_v39, 3  ;;  %v1005_v6 = vsel %vm999_vm4, %v992_v52, 920167782 }
 0x10d   :  { %v929_v51 = vclz %v1316_v25  ;;  %v1130_v2 = vshll.u32 %v1917_v59, 30  ;;  %v1000_v13 = vsel %vm996_vm5, %v980_v60, %v983_v18  ;;  %v1001_v16 = vsel %vm999_vm4, %v989_v3, 2102212464 }
 0x10e   :  { %v1004_v24 = vsel %vm996_vm5, %v983_v18, %v986_v1  ;;  %v1006_v21 = vsel %vm998_vm8, %v989_v3, %v1005_v6  ;;  %v1008_v30 = vsel %vm996_vm5, %v986_v1, %v989_v3  ;;  %v1009_v32 = vsel %vm999_vm4, %v995_v5, 1326507024  ;;  %v334_v3 = vld [vmem:[%s2280_s4 + $0x8] sm:$0xff] }
 0x10f   :  { %v1317_v17 = vadd.s32 4294967294, %v929_v51  ;;  %v1924_v11 = vsub.s32 %v1127_v38, %v1130_v2  ;;  %v1002_v36 = vsel %vm998_vm8, %v986_v1, %v1001_v16  ;;  %v1010_v38 = vsel %vm998_vm8, %v992_v52, %v1009_v32  ;;  %v333_v2 = vld [vmem:[%s2280_s4] sm:$0xff] }
 0x110   :  { %vm863_vm9 = vcmp.lt.s32.totalorder %v1804_v62, 0  ;;  %v1011_v43 = vsel %vm997_vm7, %v1008_v30, %v1010_v38  ;;  %vm1951_vm10 = vcmp.le.f32.partialorder %v861_v0, 0.7853982  ;;  %v1173_v39 = vand.u32 2139095040, %v1897_v15 }
 0x111   :  { %vm1318_vm6 = vcmp.lt.s32.totalorder %v1317_v17, 0  ;;  %v1133_v4 = vsub.s32 0, %v1924_v11  ;;  %v948_v42 = vsel %vm863_vm9, %v947_v58, %v1881_v12  ;;  %v1628_v1 = vmov 0.0|0.0  }
 0x112   :  { %v932_v8 = vsel %vm1318_vm6, 0, %v1317_v17  ;;  %v1941_v48 = vmul.u32.u64.low %v1920_v63, %v1011_v43  ;;  %v1942_v49 = vmul.u32.u64.high %v1920_v63, %v1011_v43, %v1941_v48  ;;  %v950_v60 = vsel %vm1951_vm10, 0, %v948_v42  ;;  %1523 = vmatprep.subr.bf16.mxu1 %v1628_v1  ;;  %1535 = vmatprep.subr.bf16.mxu0 %v1628_v1 }
 0x113   :  { %v933_v19 = vsub.s32 32, %v932_v8  ;;  %v934_v20 = vshll.u32 %v925_v27, %v932_v8  ;;  %v937_v22 = vsub.s32 4294967266, %v932_v8  ;;  %v1324_v56 = vmin.u32 %v1133_v4, %v1924_v11 }
 0x114   :  { %v1007_v27 = vsel %vm997_vm7, %v1004_v24, %v1006_v21  ;;  %v1123_v17 = vadd.s32 %v1885_v14, %v1891_v54  ;;  %v1174_v0 = vshrl.u32 %v1173_v39, 23  ;;  %v1170_v4 = vand.u32 2147483647, %v1897_v15 }
 0x115   :  { %v935_v34 = vshrl.u32 %v917_v45, %v933_v19  ;;  %v938_v23 = vadd.s32 127, %v937_v22  ;;  %v1135_v44 = vclz %v1324_v56  ;;  %v1003_v45 = vsel %vm997_vm7, %v1000_v13, %v1002_v36  ;;  %v335_v19 = vld [vmem:[%s2280_s4 + $0x10] sm:$0xff] }
 0x116   :  { %v1945_v52 = vmul.u32.u64.low %v1920_v63, %v1007_v27  ;;  %v1946_v55 = vmul.u32.u64.high %v1920_v63, %v1007_v27, %v1945_v52  ;;  %v1019_v18 = vmul.u32 %v1920_v63, %v1003_v45  ;;  %v1153_v63 = vsub.s32 4, %v1917_v59 }
 0x117   :  { %v936_v40 = vor.u32 %v935_v34, %v934_v20  ;;  %v939_v25 = vshll.u32 %v938_v23, 23  ;;  %v1325_v57 = vadd.s32 4294967294, %v1135_v44  ;;  %v1327_v16 = vadd.s32 4294967169, %v1174_v0  ;;  %v336_v20 = vld [vmem:[%s2280_s4 + $0x18] sm:$0xff] }
 0x118   :  { %vm1021_vm12 = vc.u32 %v1942_v49, %v1945_v52  ;;  %v1022_v5 = vadd.s32 1, %v1946_v55  ;;  %v1524_v21 = vpack.c.bf16 %v334_v3, %v333_v2  ;;  %v1987_v36 = vand.u32 3, %v950_v60 }
 0x119   :  { %v940_v50 = vor.u32 4788187, %v939_v25  ;;  %v943_v51 = vcvt.s32.f32 %v936_v40  ;;  %vm1326_vm11 = vcmp.lt.s32.totalorder %v1325_v57, 0  ;;  %v1180_v34 = vadd.s32 1, %v1327_v16 }
 0x11a   :  { %v1138_v54 = vsel %vm1326_vm11, 0, %v1325_v57  ;;  %v1023_v24 = vsel %vm1021_vm12, %v1022_v5, %v1946_v55  ;;  %vm1069_vm13 = vcmp.lt.s32.totalorder %v1814_v7, 0  ;;  %1525 = vmatpush3.bf16.msra.mxu1 %v1524_v21  ;;  %v1527_v38 = vpack.c.bf16 %v336_v20, %v335_v19 }
 0x11b   :  { %v941_v58 = vand.u32 2147483647, %v940_v50  ;;  %v1139_v6 = vsub.s32 32, %v1138_v54  ;;  %v1140_v8 = vshll.u32 %v1924_v11, %v1138_v54  ;;  %v1143_v13 = vsub.s32 4294967266, %v1138_v54  ;;  %1526 = vmatprep.subr.bf16.mxu1 %v1628_v1 }
 0x11c   :  { %v1024_v32 = vadd.s32 %v1023_v24, %v1019_v18  ;;  %v1154_v42 = vsel %vm1069_vm13, %v1153_v63, %v1917_v59  ;;  %v1177_v43 = vand.u32 8388607, %v1170_v4  ;;  %vm1181_vm14 = vcmp.gt.s32.totalorder %v1180_v34, 0 }
 0x11d   :  { %v944_v14 = vmul.f32 %v943_v51, %v941_v58  ;;  %v1141_v11 = vshrl.u32 %v1123_v17, %v1139_v6  ;;  %v1144_v30 = vadd.s32 127, %v1143_v13  ;;  %v1182_v50 = vsel %vm1181_vm14, %v1180_v34, 0 }
 0x11e   :  { %v1025_v25 = vadd.s32 536870912, %v1024_v32  ;;  %1528 = vmatpush3.bf16.msra.mxu1 %v1527_v38  ;;  %vm2003_vm15 = vcmp.le.f32.partialorder %v1067_v10, 0.7853982  ;;  %vm955_vm0 = vcmp.lt.s32.totalorder %v1987_v36, 2  ;;  %vm956_vm1 = vcmp.eq.s32.totalorder %v1987_v36, 0 }
 0x11f   :  { %v945_v22 = vxor.u32 2147483648, %v944_v14  ;;  %v1142_v27 = vor.u32 %v1141_v11, %v1140_v8  ;;  %v1145_v40 = vshll.u32 %v1144_v30, 23  ;;  %1529 = vmatprep.subr.bf16.mxu1 %v1628_v1  ;;  %v1156_v12 = vsel %vm2003_vm15, 0, %v1154_v42 }
 0x120   :  { %v1999_v48 = vshrl.u32 %v1025_v25, 30  ;;  %v1184_v57 = vand.u32 31, %v1182_v50  ;;  %vm953_vm2 = vweird.f32 %v1804_v62  ;;  %v1178_v58 = vor.u32 8388608, %v1177_v43 }
 0x121   :  { %v946_v23 = vsel %vm863_vm9, %v945_v22, %v944_v14  ;;  %v1146_v44 = vor.u32 4788187, %v1145_v40  ;;  %v1149_v45 = vcvt.s32.f32 %v1142_v27  ;;  %v2016_v60 = vshrl.u32 %v1182_v50, 5 }
 0x122   :  { %v949_v56 = vsel %vm1951_vm10, %v1804_v62, %v946_v23  ;;  %v1027_v59 = vshll.u32 %v1999_v48, 30  ;;  %vm1273_vm3 = vcmask 130048   ;;  %vm959_vm4 = vcmp.eq.s32.totalorder %v1987_v36, 2 }
 0x123   :  { %1592 = vcosq.f32 %v949_v56  ;;  %v1147_v55 = vand.u32 2147483647, %v1146_v44  ;;  %v1185_v17 = vsub.s32 32, %v1184_v57  ;;  %v1187_v18 = vshll.u32 %v1622_v28, %v1184_v57 }
 0x124   :  { %1594 = vsinq.f32 %v949_v56  ;;  %v2014_v10 = vsub.s32 %v1024_v32, %v1027_v59  ;;  %v1190_v0 = vshll.u32 %v1623_v31, %v1184_v57  ;;  %v2021_v3 = vand.u32 3, %v1156_v12 }
 0x125   :  { %v1150_v39 = vmul.f32 %v1149_v45, %v1147_v55  ;;  %v1193_v54 = vshll.u32 %v1624_v33, %v1184_v57  ;;  %v1020_v63 = vadd.s32 %v1945_v52, %v1942_v49  ;;  %v1188_v5 = vshrl.u32 %v1623_v31, %v1185_v17 }
 0x126   :  { %v1030_v14 = vsub.s32 0, %v2014_v10  ;;  %v1191_v6 = vshrl.u32 %v1624_v33, %v1185_v17  ;;  %v1194_v8 = vshrl.u32 %v1625_v35, %v1185_v17  ;;  %vm1202_vm5 = vcmp.lt.s32.totalorder %v2016_v60, 1 }
 0x127   :  { %v1151_v2 = vxor.u32 2147483648, %v1150_v39  ;;  %v2034_v19 = vshll.u32 %v1178_v58, 8  ;;  %v1186_v31 = vshrl.u32 %v1622_v28, %v1185_v17  ;;  %v1189_v52 = vor.u32 %v1188_v5, %v1187_v18  ;;  %v2086_v58 = vld [vmem:[%s2282_s6] sm:$0xff]  ;;  %v412_v18 = vld [vmem:[%s2280_s4 + $0x28] sm:$0xff] }
 0x128   :  { %v1320_v16 = vmin.u32 %v1030_v14, %v2014_v10  ;;  %v1192_v33 = vor.u32 %v1191_v6, %v1190_v0  ;;  %v1195_v11 = vor.u32 %v1194_v8, %v1193_v54  ;;  %v1196_v32 = vshll.u32 %v1625_v35, %v1184_v57  ;;  %v413_v14 = vld [vmem:[%s2280_s4 + $0x30] sm:$0xff]  ;;  %v414_v54 = vld [vmem:[%s2280_s4 + $0x38] sm:$0xff] }
 0x129   :  { %v1152_v13 = vsel %vm1069_vm13, %v1151_v2, %v1150_v39  ;;  %v1197_v34 = vshrl.u32 %v1626_v37, %v1185_v17  ;;  %v1199_v56 = vshll.u32 %v1626_v37, %v1184_v57  ;;  %v1200_v28 = vshrl.u32 %v1627_v46, %v1185_v17  ;;  %v411_v17 = vld [vmem:[%s2280_s4 + $0x20] sm:$0xff] }
 0x12a   :  { %v1155_v49 = vsel %vm2003_vm15, %v1814_v7, %v1152_v13  ;;  %v1032_v21 = vclz %v1320_v16  ;;  %vm1162_vm6 = vcmp.eq.s32.totalorder %v2021_v3, 0  ;;  %vm1203_vm7 = vcmp.lt.s32.totalorder %v2016_v60, 2  ;;  %v321_v13 = vld [vmem:[%s2283_s3] sm:$0xff]  ;;  %v322_v16 = vld [vmem:[%s2283_s3 + $0x8] sm:$0xff] }
 0x12b   :  { %1596 = vcosq.f32 %v1155_v49  ;;  %v1198_v40 = vor.u32 %v1197_v34, %v1196_v32  ;;  %vm1204_vm8 = vcmp.lt.s32.totalorder %v2016_v60, 3  ;;  %vm1161_vm9 = vcmp.lt.s32.totalorder %v2021_v3, 2 }
 0x12c   :  { %1598 = vsinq.f32 %v1155_v49  ;;  %v1321_v38 = vadd.s32 4294967294, %v1032_v21  ;;  %v1201_v25 = vor.u32 %v1200_v28, %v1199_v56  ;;  %vm1205_vm11 = vcmp.lt.s32.totalorder %v2016_v60, 4 }
 0x12d   :  { %v1593_v20 = vpop.eup %1592  ;;  %vm1159_vm12 = vweird.f32 %v1814_v7  ;;  %v1206_v42 = vsel %vm1202_vm5, %v1186_v31, %v1189_v52  ;;  %v1207_v43 = vsel %vm1205_vm11, %v1195_v11, 2102212464  ;;  %v1210_v51 = vsel %vm1202_vm5, %v1189_v52, %v1192_v33  ;;  %v1292_v7 = vld [vmem:[%s2278_s5 + $0x1] ss:$0 sm:$0xff] }
 0x12e   :  { %v1595_v22 = vpop.eup %1594  ;;  %v960_v24 = vxor.u32 2147483648, %v1593_v20  ;;  %vm1322_vm10 = vcmp.lt.s32.totalorder %v1321_v38, 0  ;;  %v1208_v62 = vsel %vm1204_vm8, %v1192_v33, %v1207_v43  ;;  %v1211_v55 = vsel %vm1205_vm11, %v1198_v40, 920167782 }
 0x12f   :  { %v957_v30 = vxor.u32 2147483648, %v1595_v22  ;;  %v1035_v46 = vsel %vm1322_vm10, 0, %v1321_v38  ;;  %v2071_v50 = vsel %vm1203_vm7, %v1206_v42, %v1208_v62  ;;  %v1214_v59 = vsel %vm1202_vm5, %v1192_v33, %v1195_v11  ;;  %v328_v62 = vld [vmem:[%s2283_s3 + $0x38] sm:$0xff] }
 0x130   :  { %v961_v23 = vsel %vm959_vm4, %v960_v24, %v1595_v22  ;;  %v1036_v36 = vsub.s32 32, %v1035_v46  ;;  %v1037_v44 = vshll.u32 %v2014_v10, %v1035_v46  ;;  %v1040_v45 = vsub.s32 4294967266, %v1035_v46 }
 0x131   :  { %v958_v27 = vsel %vm956_vm1, %v1593_v20, %v957_v30  ;;  %v1212_v39 = vsel %vm1204_vm8, %v1195_v11, %v1211_v55  ;;  %v1215_v10 = vsel %vm1205_vm11, %v1201_v25, 1326507024  ;;  %vm1165_vm13 = vcmp.eq.s32.totalorder %v2021_v3, 2  ;;  %v323_v11 = vld [vmem:[%s2283_s3 + $0x10] sm:$0xff]  ;;  %v324_v30 = vld [vmem:[%s2283_s3 + $0x18] sm:$0xff] }
 0x132   :  { %v962_v35 = vsel %vm955_vm0, %v958_v27, %v961_v23  ;;  %v1038_v12 = vshrl.u32 %v1020_v63, %v1036_v36  ;;  %v1041_v57 = vadd.s32 127, %v1040_v45  ;;  %v1213_v0 = vsel %vm1203_vm7, %v1210_v51, %v1212_v39  ;;  %v325_v27 = vld [vmem:[%s2283_s3 + $0x20] sm:$0xff]  ;;  %v327_v45 = vld [vmem:[%s2283_s3 + $0x30] sm:$0xff] }
 0x133   :  { %v963_v37 = vsel %vm953_vm2, nan, %v962_v35  ;;  %v1216_v2 = vsel %vm1204_vm8, %v1198_v40, %v1215_v10  ;;  %vm1629_vm14 = vmmov 0   ;;  %vm337_vm15 = vcmask 261120   ;;  %v326_v40 = vld [vmem:[%s2283_s3 + $0x28] sm:$0xff] }
 0x134   :  { %1274 = vst.msk [vmem:[%s2281_s11] sm:$0xff] %vm1273_vm3, %v963_v37  ;;  %v1039_v5 = vor.u32 %v1038_v12, %v1037_v44  ;;  %v1042_v6 = vshll.u32 %v1041_v57, 23  ;;  %v1217_v8 = vsel %vm1203_vm7, %v1214_v59, %v1216_v2  ;;  %1437 = vmatprep.mubr.msk.f32.mxu1 %vm1629_vm14, %v1621_v29  ;;  %1459 = vmatprep.mubr.msk.f32.mxu0 %vm1629_vm14, %v1621_v29  ;;  %vm966_vm1 = vcmp.lt.s32.totalorder %v1817_v9, 0 }
 0x135   :  { %v1597_v63 = vpop.eup %1596  ;;  %v2118_v60 = vmul.u32.u64.low %v2034_v19, %v1217_v8  ;;  %v2119_v31 = vmul.u32.u64.high %v2034_v19, %v1217_v8, %v2118_v60  ;;  %1438 = vmatmul.mubr.msk.f32.vlgmr.msra.gmra.mrb[4].mxu1 %vm337_vm15, %v2086_v58  ;;  %v1530_v52 = vpack.c.bf16 %v412_v18, %v411_v17  ;;  %v1533_v21 = vpack.c.bf16 %v414_v54, %v413_v14 }
 0x136   :  { %v1599_v20 = vpop.eup %1598  ;;  %v1166_v49 = vxor.u32 2147483648, %v1597_v63  ;;  %v1043_v22 = vor.u32 4788187, %v1042_v6  ;;  %v1046_v24 = vcvt.s32.f32 %v1039_v5  ;;  %1448 = vmatprep.mubr.msk.f32.mxu1 %vm1629_vm14, %v1621_v29  ;;  %v1536_v38 = vpack.c.bf16 %v322_v16, %v321_v13 }
 0x137   :  { %v1163_v33 = vxor.u32 2147483648, %v1599_v20  ;;  %v2134_v34 = vmul.u32.u64.low %v2034_v19, %v1213_v0  ;;  %v2135_v23 = vmul.u32.u64.high %v2034_v19, %v1213_v0, %v2134_v34  ;;  %1531 = vmatpush3.bf16.msra.mxu1 %v1530_v52  ;;  %v1539_v37 = vpack.c.bf16 %v324_v30, %v323_v11 }
 0x138   :  { %v1167_v32 = vsel %vm1165_vm13, %v1166_v49, %v1599_v20  ;;  %v1044_v28 = vand.u32 2147483647, %v1043_v22  ;;  %1532 = vmatprep.subr.bf16.mxu1 %v1628_v1  ;;  %1537 = vmatpush3.bf16.msra.mxu0 %v1536_v38  ;;  %v1225_v43 = vmul.u32 %v2034_v19, %v2071_v50  ;;  %v1542_v36 = vpack.c.bf16 %v326_v40, %v325_v27 }
 0x139   :  { %v1164_v56 = vsel %vm1162_vm6, %v1597_v63, %v1163_v33  ;;  %v2149_v25 = vadd.s32 %v2134_v34, %v2119_v31  ;;  %vm1227_vm0 = vc.u32 %v2119_v31, %v2134_v34  ;;  %1538 = vmatprep.subr.bf16.mxu0 %v1628_v1  ;;  %v1228_v3 = vadd.s32 1, %v2135_v23 }
 0x13a   :  { %v1168_v35 = vsel %vm1161_vm9, %v1164_v56, %v1167_v32  ;;  %v1047_v42 = vmul.f32 %v1046_v24, %v1044_v28  ;;  %vm2165_vm2 = vcmp.le.f32.partialorder %v964_v26, 0.7853982  ;;  %v1050_v44 = vsub.s32 4, %v1999_v48 }
 0x13b   :  { %v1169_v46 = vsel %vm1159_vm12, nan, %v1168_v35  ;;  %1534 = vmatpush3.bf16.msra.mxu1 %v1533_v21  ;;  %v1229_v26 = vsel %vm1227_vm0, %v1228_v3, %v2135_v23  ;;  %v1545_v59 = vpack.c.bf16 %v328_v62, %v327_v45  ;;  %vm1056_vm7 = vweird.f32 %v1817_v9 }
 0x13c   :  { %1276 = vst.msk [vmem:[%s2281_s11 + $0x10] sm:$0xff] %vm1273_vm3, %v1169_v46  ;;  %v1048_v19 = vxor.u32 2147483648, %v1047_v42  ;;  %1541 = vmatprep.subr.bf16.mxu1 %v1628_v1  ;;  %1540 = vmatpush3.bf16.msra.mxu0 %v1539_v37  ;;  %v1230_v51 = vadd.s32 %v1229_v26, %v1225_v43  ;;  %v1051_v12 = vsel %vm966_vm1, %v1050_v44, %v1999_v48  ;;  %vm1172_vm9 = vcmp.lt.s32.totalorder %v1897_v15, 0 }
 0x13d   :  { %1547 = vmatprep.subr.bf16.mxu0 %v1628_v1  ;;  %v1053_v10 = vsel %vm2165_vm2, 0, %v1051_v12  ;;  %vm1171_vm10 = vcmp.le.f32.partialorder %v1170_v4, 0.7853982  ;;  %vm1262_vm0 = vweird.f32 %v1897_v15 }
 0x13e   :  { %v1049_v50 = vsel %vm966_vm1, %v1048_v19, %v1047_v42  ;;  %1449 = vmatmul.mubr.msk.f32.vlgmr.msra.gmra.mrb[6].mxu1 %vm337_vm15, %v2086_v58  ;;  %v1231_v57 = vadd.s32 536870912, %v1230_v51  ;;  %v1057_v18 = vand.u32 3, %v1053_v10  ;;  %v1590_v19 = vunpack.i.h.bf16 %v1783_v47 }
 0x13f   :  { %v1052_v55 = vsel %vm2165_vm2, %v1817_v9, %v1049_v50  ;;  %1543 = vmatpush3.bf16.msra.mxu1 %v1542_v36  ;;  %1470 = vmatprep.mubr.msk.f32.mxu1 %vm1629_vm14, %v1621_v29 }
 0x140   :  { %1600 = vcosq.f32 %v1052_v55  ;;  %1544 = vmatprep.subr.bf16.mxu1 %v1628_v1  ;;  %v1232_v39 = vshrl.u32 %v1231_v57, 30  ;;  %vm1062_vm4 = vcmp.eq.s32.totalorder %v1057_v18, 2  ;;  %vm1059_vm5 = vcmp.eq.s32.totalorder %v1057_v18, 0 }
 0x141   :  { %1602 = vsinq.f32 %v1052_v55  ;;  %vm1058_vm6 = vcmp.lt.s32.totalorder %v1057_v18, 2 }
 0x142   :  { %v1233_v17 = vshll.u32 %v1232_v39, 30  ;;  %v1256_v38 = vsub.s32 4, %v1232_v39 }
 0x143   :  { %1546 = vmatpush3.bf16.msra.mxu1 %v1545_v59 }
 0x144   :  { %1553 = vmatprep.subr.bf16.mxu1 %v1628_v1  ;;  %v1234_v0 = vsub.s32 %v1230_v51, %v1233_v17  ;;  %v1257_v27 = vsel %vm1172_vm9, %v1256_v38, %v1232_v39 }
 0x145   :  { %v1259_v40 = vsel %vm1171_vm10, 0, %v1257_v27 }
 0x146   :  { %v1236_v2 = vsub.s32 0, %v1234_v0  ;;  %v1263_v35 = vand.u32 3, %v1259_v40 }
 0x148   :  { %v1328_v54 = vmin.u32 %v1236_v2, %v1234_v0  ;;  %vm1268_vm11 = vcmp.eq.s32.totalorder %v1263_v35, 2  ;;  %vm1265_vm12 = vcmp.eq.s32.totalorder %v1263_v35, 0  ;;  %vm1264_vm13 = vcmp.lt.s32.totalorder %v1263_v35, 2  ;;  %v486_v2 = vld [vmem:[%s2280_s4 + $0x48] sm:$0xff] }
 0x14a   :  { %v1601_v14 = vpop.eup %1600  ;;  %v1238_v6 = vclz %v1328_v54 }
 0x14b   :  { %v1603_v48 = vpop.eup %1602  ;;  %v1063_v63 = vxor.u32 2147483648, %v1601_v14 }
 0x14c   :  { %v1060_v5 = vxor.u32 2147483648, %v1603_v48  ;;  %v1329_v16 = vadd.s32 4294967294, %v1238_v6  ;;  %v487_v6 = vld [vmem:[%s2280_s4 + $0x50] sm:$0xff] }
 0x14d   :  { %v1064_v8 = vsel %vm1062_vm4, %v1063_v63, %v1603_v48  ;;  %v331_v48 = vld [vmem:[%s2283_s3 + $0x50] sm:$0xff]  ;;  %v332_v63 = vld [vmem:[%s2283_s3 + $0x58] sm:$0xff] }
 0x14e   :  { %v1061_v13 = vsel %vm1059_vm5, %v1601_v14, %v1060_v5  ;;  %vm1330_vm8 = vcmp.lt.s32.totalorder %v1329_v16, 0 }
 0x14f   :  { %v1065_v20 = vsel %vm1058_vm6, %v1061_v13, %v1064_v8  ;;  %v1241_v60 = vsel %vm1330_vm8, 0, %v1329_v16  ;;  %v488_v8 = vld [vmem:[%s2280_s4 + $0x58] sm:$0xff]  ;;  %v1551_v13 = vpack.c.bf16 %v332_v63, %v331_v48 }
 0x150   :  { %v1066_v49 = vsel %vm1056_vm7, nan, %v1065_v20  ;;  %v1242_v31 = vsub.s32 32, %v1241_v60  ;;  %v1243_v52 = vshll.u32 %v1234_v0, %v1241_v60  ;;  %v1246_v33 = vsub.s32 4294967266, %v1241_v60  ;;  %v329_v0 = vld [vmem:[%s2283_s3 + $0x40] sm:$0xff] }
 0x151   :  { %1275 = vst.msk [vmem:[%s2281_s11 + $0x8] sm:$0xff] %vm1273_vm3, %v1066_v49  ;;  %v1557_v16 = vpack.c.bf16 %v488_v8, %v487_v6 }
 0x152   :  { %v1244_v22 = vshrl.u32 %v2149_v25, %v1242_v31  ;;  %v1247_v24 = vadd.s32 127, %v1246_v33  ;;  %v1304_v33 = vld [vmem:[%s2278_s5 + $0x2] ss:$0 sm:$0xff] }
 0x154   :  { %v1245_v21 = vor.u32 %v1244_v22, %v1243_v52  ;;  %v1248_v9 = vshll.u32 %v1247_v24, 23 }
 0x156   :  { %v1249_v11 = vor.u32 4788187, %v1248_v9  ;;  %v1252_v30 = vcvt.s32.f32 %v1245_v21 }
 0x158   :  { %v1250_v32 = vand.u32 2147483647, %v1249_v11  ;;  %v1307_v11 = vld [vmem:[%s2278_s5 + $0x3] ss:$0 sm:$0xff] }
 0x15a   :  { %v1253_v34 = vmul.f32 %v1252_v30, %v1250_v32 }
 0x15c   :  { %v1254_v23 = vxor.u32 2147483648, %v1253_v34 }
 0x15e   :  { %v1255_v56 = vsel %vm1172_vm9, %v1254_v23, %v1253_v34 }
 0x15f   :  { %v1258_v28 = vsel %vm1171_vm10, %v1897_v15, %v1255_v56  ;;  %v1589_v15 = vunpack.i.l.bf16 %v1783_v47  ;;  %v485_v47 = vld [vmem:[%s2280_s4 + $0x40] sm:$0xff] }
 0x160   :  { %1604 = vcosq.f32 %v1258_v28  ;;  %v1554_v5 = vpack.c.bf16 %v486_v2, %v485_v47 }
 0x161   :  { %1606 = vsinq.f32 %v1258_v28 }
 0x162   :  { %1608 = vrcp.f32 %v1778_v41  ;;  %v330_v41 = vld [vmem:[%s2283_s3 + $0x48] sm:$0xff] }
 0x16a   :  { %v1605_v25 = vpop.eup %1604 }
 0x16b   :  { %v1607_v37 = vpop.eup %1606  ;;  %v1269_v46 = vxor.u32 2147483648, %v1605_v25 }
 0x16c   :  { %v1266_v42 = vxor.u32 2147483648, %v1607_v37  ;;  %v1609_v14 = vpop.eup %1608 }
 0x16d   :  { %v1270_v4 = vsel %vm1268_vm11, %v1269_v46, %v1607_v37 }
 0x16e   :  { %v1267_v43 = vsel %vm1265_vm12, %v1605_v25, %v1266_v42  ;;  %v1311_v25 = vld [vmem:[%s2278_s5 + $0x5] ss:$0 sm:$0xff]  ;;  %v1309_v42 = vld [vmem:[%s2278_s5 + $0x4] ss:$0 sm:$0xff] }
 0x16f   :  { %v1271_v3 = vsel %vm1264_vm13, %v1267_v43, %v1270_v4 }
 0x170   :  { %v1272_v36 = vsel %vm1262_vm0, nan, %v1271_v3 }
 0x171   :  { %1277 = vst.msk [vmem:[%s2281_s11 + $0x18] sm:$0xff] %vm1273_vm3, %v1272_v36 }
 0x1c7   :  { %v1425_v44 = vpop.f32.mrb[0].mxu1 }
 0x1c8   :  { %v258_v45 = vadd.f32 %v1425_v44, %v1292_v7  ;;  %v252_v62 = vpop.f32.mrb[1].mxu1 }
 0x1c9   :  { %v253_v26 = vadd.f32 %v1292_v7, %v252_v62 }
 0x1ca   :  { %v290_v50 = vmul.f32 %v1590_v19, %v258_v45  ;;  %v815_v45 = vpop.permute.xlu0 %814 }
 0x1cb   :  { %v280_v51 = vmul.f32 %v1589_v15, %v253_v26  ;;  %v1428_v55 = vpop.f32.mrb[2].mxu1  ;;  %vm816_vm3 = vcmp.eq.s32.totalorder %v815_v45, 1 }
 0x1cc   :  { %v262_v59 = vpop.f32.mrb[3].mxu1  ;;  %v268_v57 = vadd.f32 %v1428_v55, %v1292_v7 }
 0x1cd   :  { %v291_v12 = vadd.f32 %v290_v50, %v280_v51  ;;  %v263_v39 = vadd.f32 %v1292_v7, %v262_v59 }
 0x1ce   :  { %v310_v17 = vmul.f32 %v1800_v61, %v268_v57  ;;  %v1548_v61 = vpack.c.bf16 %v330_v41, %v329_v0 }
 0x1cf   :  { %v300_v10 = vmul.f32 %v1785_v53, %v263_v39 }
 0x1d1   :  { %v301_v18 = vadd.f32 %v300_v10, %v291_v12 }
 0x1d3   :  { %v311_v53 = vadd.f32 %v310_v17, %v301_v18 }
 0x1d5   :  { %v319_v54 = vmul.f32 %v1609_v14, %v311_v53 }
 0x1d7   :  { %1460 = vmatmul.mubr.msk.f32.vlgmr.msra.gmra.mrb[4].mxu0 %vm337_vm15, %v319_v54  ;;  %1471 = vmatmul.mubr.msk.f32.vlgmr.msra.gmra.mrb[8].mxu1 %vm337_vm15, %v319_v54 }
 0x1d8   :  { %1549 = vmatpush3.bf16.msra.mxu0 %v1548_v61  ;;  %1481 = vmatprep.mubr.msk.f32.mxu0 %vm1629_vm14, %v1621_v29 }
 0x1d9   :  { %1550 = vmatprep.subr.bf16.mxu0 %v1628_v1  ;;  %1555 = vmatpush3.bf16.msra.mxu1 %v1554_v5 }
 0x1da   :  { %1556 = vmatprep.subr.bf16.mxu1 %v1628_v1  ;;  %1492 = vmatprep.mubr.msk.f32.mxu1 %vm1629_vm14, %v1621_v29 }
 0x1dc   :  { %1552 = vmatpush3.bf16.msra.mxu0 %v1551_v13 }
 0x1dd   :  { %1558 = vmatpush3.bf16.msra.mxu1 %v1557_v16 }
 0x1df   :  { %1482 = vmatmul.mubr.msk.f32.vlgmr.msra.gmra.mrb[6].mxu0 %vm337_vm15, %v319_v54 }
 0x1e0   :  { %1493 = vmatmul.mubr.msk.f32.vlgmr.msra.gmra.mrb[10].mxu1 %vm337_vm15, %v2086_v58 }
 0x208   :  { %v407_v20 = vpop.f32.mrb[4].mxu1 }
 0x209   :  { %v1439_v49 = vpop.f32.mrb[5].mxu1 }
 0x211   :  { %v481_v60 = vpop.f32.mrb[6].mxu1 }
 0x212   :  { %v1450_v31 = vpop.f32.mrb[7].mxu1 }
 0x2aa   :  { %v558_v52 = vpop.f32.mrb[4].mxu0  ;;  %v640_v1 = vpop.f32.mrb[8].mxu1 }
 0x2ab   :  { %v559_v22 = vadd.f32 %v558_v52, %v407_v20  ;;  %v641_v24 = vadd.f32 %v640_v1, %v481_v60  ;;  %v1461_v29 = vpop.f32.mrb[5].mxu0  ;;  %v1472_v21 = vpop.f32.mrb[9].mxu1 }
 0x2ad   :  { %v567_v9 = vadd.f32 %v1304_v33, %v559_v22  ;;  %v649_v32 = vadd.f32 %v1307_v11, %v641_v24 }
 0x2af   :  { %v1305_v30 = vmul.f32 -1.442695, %v567_v9  ;;  %v1308_v56 = vmul.f32 -1.442695, %v649_v32 }
 0x2b1   :  { %1610 = vpow2.f32 %v1305_v30 }
 0x2b2   :  { %v727_v34 = vpop.f32.mrb[6].mxu0  ;;  %1612 = vpow2.f32 %v1308_v56 }
 0x2b3   :  { %v1483_v23 = vpop.f32.mrb[7].mxu0  ;;  %v802_v38 = vpop.f32.mrb[10].mxu1  ;;  %v728_v43 = vadd.f32 %v1309_v42, %v727_v34 }
 0x2b4   :  { %v1494_v28 = vpop.f32.mrb[11].mxu1  ;;  %v803_v46 = vadd.f32 %v1311_v25, %v802_v38 }
 0x2bb   :  { %v1611_v27 = vpop.eup %1610 }
 0x2bc   :  { %v571_v40 = vadd.f32 1.0, %v1611_v27  ;;  %v1613_v35 = vpop.eup %1612 }
 0x2bd   :  { %v653_v37 = vadd.f32 1.0, %v1613_v35 }
 0x2be   :  { %1614 = vrcp.f32 %v571_v40 }
 0x2bf   :  { %1616 = vrcp.f32 %v653_v37 }
 0x2c8   :  { %v1615_v4 = vpop.eup %1614 }
 0x2c9   :  { %v806_v3 = vmul.f32 %v1615_v4, %v803_v46  ;;  %v1617_v7 = vpop.eup %1616 }
 0x2ca   :  { %v809_v19 = vsub.f32 1.0, %v1617_v7  ;;  %v811_v62 = vmul.f32 %v1617_v7, %v2086_v58 }
 0x2cb   :  { %v807_v36 = vadd.f32 %v806_v3, %v728_v43 }
 0x2cd   :  { %1618 = vtanh.f32 %v807_v36 }
 0x2d7   :  { %v1619_v44 = vpop.eup %1618 }
 0x2d8   :  { %v810_v15 = vmul.f32 %v1619_v44, %v809_v19 }
 0x2da   :  { %v812_v26 = vadd.f32 %v811_v62, %v810_v15 }
 0x2dc   :  { %v817_v50 = vsel %vm816_vm3, %v812_v26, %v2086_v58 }
 0x2dd   :  { %818 = vst.msk [vmem:[%s2284_s10] sm:$0xff] %vm337_vm15, %v817_v50 }

</bundles_post_ra>
